<compile_context>
chip_gen: v7x
topology: tpu7x:2x2x1
jax: 0.10.0
libtpu: 0.0.40
codegen_flags: <defaults>
</compile_context>

<pallas_src>
import functools

import jax
import jax.numpy as jnp
from jax.experimental import pallas as pl
from jax.experimental.pallas import tpu as pltpu

LN_EPS = 1e-5  # PyTorch nn.LayerNorm default


def _round_up(x, m):
    return (x + m - 1) // m * m


# --------------------------------------------------------------------------
# Kernel
# --------------------------------------------------------------------------
def mapping_mlp3_kernel(x_ref, w1_ref, w2_ref, w3_ref, p_ref, o_ref, *, n_hidden):
    """One batch tile: (tm, d) -> (tm, d).

    p_ref rows: 0=b1, 1=gamma1, 2=beta1, 3=b2, 4=gamma2, 5=beta2 (padded to 8).
    Padded hidden lanes (>= n_hidden) of all weights/biases are zero, except
    beta2[n_hidden] == 1 which (after LN2 + ReLU) feeds w3 row n_hidden == b3,
    so the net3 bias is produced by the final matmul for free.
    """
    x = x_ref[...].astype(jnp.float32)                 # single cast, in-kernel
    hp = w1_ref.shape[1]

    b1, g1, be1 = p_ref[0:1, :], p_ref[1:2, :], p_ref[2:3, :]
    b2, g2, be2 = p_ref[3:4, :], p_ref[4:5, :], p_ref[5:6, :]

    lane = jax.lax.broadcasted_iota(jnp.int32, (1, hp), 1)
    mask = lane < n_hidden
    inv_n = 1.0 / n_hidden

    def masked_layernorm(h, gamma, beta):
        # padded lanes of h are exactly zero, so a full-lane sum == real sum
        mu = jnp.sum(h, axis=-1, keepdims=True) * inv_n
        c = jnp.where(mask, h - mu, 0.0)
        var = jnp.sum(c * c, axis=-1, keepdims=True) * inv_n
        return c * jax.lax.rsqrt(var + LN_EPS) * gamma + beta

    # net1: Linear -> LayerNorm -> ReLU
    h1 = jnp.dot(x, w1_ref[...], preferred_element_type=jnp.float32) + b1
    h1 = jnp.maximum(masked_layernorm(h1, g1, be1), 0.0)

    # net2: Linear -> LayerNorm -> ReLU  (lane n_hidden becomes 1 via beta2)
    h2 = jnp.dot(h1, w2_ref[...], preferred_element_type=jnp.float32) + b2
    h2 = jnp.maximum(masked_layernorm(h2, g2, be2), 0.0)

    # net3: Linear (+bias folded into w3 row n_hidden) -> Sigmoid (EUP path)
    h3 = jnp.dot(h2, w3_ref[...], preferred_element_type=jnp.float32)
    o_ref[...] = jax.nn.sigmoid(h3).astype(o_ref.dtype)


# --------------------------------------------------------------------------
# Parameter handling
# --------------------------------------------------------------------------
def init_params(key, seq_length, embed_dim, hidden_size=80):
    """PyTorch-style init; natural (unpadded) shapes, weights stored (in, out)."""
    d_in = seq_length * embed_dim
    ks = jax.random.split(key, 6)

    def lin(kw, kb, fan_in, fan_out):
        bound = 1.0 / jnp.sqrt(fan_in)
        w = jax.random.uniform(kw, (fan_in, fan_out), jnp.float32, -bound, bound)
        b = jax.random.uniform(kb, (1, fan_out), jnp.float32, -bound, bound)
        return w, b

    w1, b1 = lin(ks[0], ks[1], d_in, hidden_size)
    w2, b2 = lin(ks[2], ks[3], hidden_size, hidden_size)
    w3, b3 = lin(ks[4], ks[5], hidden_size, d_in)

    ones = jnp.ones((1, hidden_size), jnp.float32)
    zeros = jnp.zeros((1, hidden_size), jnp.float32)
    return dict(w1=w1, b1=b1, g1=ones, be1=zeros,
                w2=w2, b2=b2, g2=ones, be2=zeros,
                w3=w3, b3=b3)


def prepare_params(params, *, hidden_size):
    """Pad hidden to a lane-aligned Hp (>= H+1) and pack the small vectors."""
    H = hidden_size
    Hp = _round_up(H + 1, 128)          # >= H+1 so lane H is free for the b3 trick
    f32 = jnp.float32
    pad_h = Hp - H

    w1p = jnp.pad(params["w1"].astype(f32), ((0, 0), (0, pad_h)))      # (d, Hp)
    w2p = jnp.pad(params["w2"].astype(f32), ((0, pad_h), (0, pad_h)))  # (Hp, Hp)
    w3p = jnp.pad(params["w3"].astype(f32), ((0, pad_h), (0, 0)))      # (Hp, d)
    # Fold the net3 bias into the (otherwise zero) row H of w3.
    w3p = w3p.at[H, :].set(params["b3"].reshape(-1).astype(f32))

    def padvec(v):
        return jnp.pad(v.reshape(1, -1).astype(f32), ((0, 0), (0, pad_h)))

    be2p = padvec(params["be2"]).at[0, H].set(1.0)   # lane H -> 1 after LN2 + ReLU

    pvec = jnp.concatenate(
        [padvec(params["b1"]), padvec(params["g1"]), padvec(params["be1"]),
         padvec(params["b2"]), padvec(params["g2"]), be2p,
         jnp.zeros((2, Hp), f32)],                   # pad to 8 sublanes
        axis=0)                                      # (8, Hp)

    return dict(w1=w1p, w2=w2p, w3=w3p, pvec=pvec)


# --------------------------------------------------------------------------
# Wrapper
# --------------------------------------------------------------------------
@functools.partial(jax.jit,
                   static_argnames=("seq_length", "embed_dim", "hidden_size", "tile_m"))
def mapping_mlp3_forward(x, kparams, *, seq_length, embed_dim,
                         hidden_size=80, tile_m=128):
    origin_shape = x.shape
    if origin_shape[1] != seq_length:
        # NB: mirrors the PyTorch module, which reshapes the output straight
        # back to origin_shape without undoing this transpose.
        x = jnp.swapaxes(x, 0, 1)

    bs = x.shape[0]
    d = seq_length * embed_dim
    x_flat = jnp.reshape(x, (bs, d))                 # keep source dtype; cast in-kernel

    # sublane-aligned batch tile (8 for f32, 16 for bf16, ...)
    sub = max(8, 32 // jnp.dtype(x_flat.dtype).itemsize)
    tm = min(tile_m, _round_up(bs, sub))
    bs_pad = _round_up(bs, tm)
    if bs_pad != bs:
        x_flat = jnp.pad(x_flat, ((0, bs_pad - bs), (0, 0)))

    hp = kparams["w1"].shape[1]
    grid = (bs_pad // tm,)

    out_flat = pl.pallas_call(
        functools.partial(mapping_mlp3_kernel, n_hidden=hidden_size),
        out_shape=jax.ShapeDtypeStruct((bs_pad, d), jnp.float32),
        grid=grid,
        in_specs=[
            pl.BlockSpec((tm, d), lambda i: (i, 0)),     # x: streamed per batch tile
            pl.BlockSpec((d, hp), lambda i: (0, 0)),     # w1: resident across tiles
            pl.BlockSpec((hp, hp), lambda i: (0, 0)),    # w2
            pl.BlockSpec((hp, d), lambda i: (0, 0)),     # w3 (+b3 folded in)
            pl.BlockSpec((8, hp), lambda i: (0, 0)),     # packed b/gamma/beta vectors
        ],
        out_specs=pl.BlockSpec((tm, d), lambda i: (i, 0)),
        compiler_params=pltpu.CompilerParams(
            dimension_semantics=("parallel",),           # megacore split where available
            vmem_limit_bytes=32 * 1024 * 1024,
        ),
    )(x_flat, kparams["w1"], kparams["w2"], kparams["w3"], kparams["pvec"])

    out = out_flat[:bs]
    # reshape to the ORIGINAL (pre-transpose) shape, exactly as PyTorch does
    return jnp.reshape(out, origin_shape)


# --------------------------------------------------------------------------
# Pure-JAX reference (unpadded params)
# --------------------------------------------------------------------------
def reference_forward(x, params, seq_length, embed_dim):
    origin_shape = x.shape
    if origin_shape[1] != seq_length:
        x = jnp.swapaxes(x, 0, 1)
    xf = jnp.reshape(x, (x.shape[0], -1)).astype(jnp.float32)

    def ln(h, g, b):
        mu = jnp.mean(h, -1, keepdims=True)
        var = jnp.mean((h - mu) ** 2, -1, keepdims=True)
        return (h - mu) / jnp.sqrt(var + LN_EPS) * g + b

    h1 = jax.nn.relu(ln(xf @ params["w1"] + params["b1"], params["g1"], params["be1"]))
    h2 = jax.nn.relu(ln(h1 @ params["w2"] + params["b2"], params["g2"], params["be2"]))
    h3 = jax.nn.sigmoid(h2 @ params["w3"] + params["b3"])
    return jnp.reshape(h3, origin_shape)


if __name__ == "__main__":
    # Small shapes consistent with the module: bs=2, seq=8, embed=32, hidden=80
    bs, seq_length, embed_dim, hidden_size = 2, 8, 32, 80

    key = jax.random.PRNGKey(0)
    k_x, k_p = jax.random.split(key)
    x = jax.random.normal(k_x, (bs, seq_length, embed_dim), dtype=jnp.float32)

    params = init_params(k_p, seq_length, embed_dim, hidden_size)
    kparams = prepare_params(params, hidden_size=hidden_size)

    out = mapping_mlp3_forward(x, kparams, seq_length=seq_length,
                               embed_dim=embed_dim, hidden_size=hidden_size)
    out = jax.block_until_ready(out)

    ref = reference_forward(x, params, seq_length, embed_dim)
    assert out.shape == x.shape, (out.shape, x.shape)
    assert out.dtype == jnp.float32
    assert jnp.allclose(out, ref, atol=1e-5, rtol=1e-5), "mismatch vs reference"

    print("KERNEL_OK")
</pallas_src>

<mosaic_0001>
module attributes {stable_mosaic.version = 11 : i64} {
  func.func @mapping_mlp3_kernel(%arg0: i32, %arg1: memref<8x256xf32, #tpu.memory_space<vmem>>, %arg2: memref<256x128xf32, #tpu.memory_space<vmem>>, %arg3: memref<128x128xf32, #tpu.memory_space<vmem>>, %arg4: memref<128x256xf32, #tpu.memory_space<vmem>>, %arg5: memref<8x128xf32, #tpu.memory_space<vmem>>, %arg6: memref<8x256xf32, #tpu.memory_space<vmem>>) attributes {dimension_semantics = [#tpu.dimension_semantics<parallel>], iteration_bounds = array<i64: 1>, scalar_prefetch = 0 : i64, scratch_operands = 0 : i64, tpu.core_type = #tpu.core_type<tc>, window_params = [{transform_indices = @transform_0, window_bounds = array<i64: 8, 256>}, {pipeline_mode = #tpu.pipeline_mode<synchronous>, transform_indices = @transform_1, window_bounds = array<i64: 256, 128>}, {pipeline_mode = #tpu.pipeline_mode<synchronous>, transform_indices = @transform_2, window_bounds = array<i64: 128, 128>}, {pipeline_mode = #tpu.pipeline_mode<synchronous>, transform_indices = @transform_3, window_bounds = array<i64: 128, 256>}, {pipeline_mode = #tpu.pipeline_mode<synchronous>, transform_indices = @transform_4, window_bounds = array<i64: 8, 128>}, {transform_indices = @transform_5, window_bounds = array<i64: 8, 256>}]} {
    %c0 = arith.constant 0 : index
    %c0_0 = arith.constant 0 : index
    %0 = vector.load %arg1[%c0, %c0_0] : memref<8x256xf32, #tpu.memory_space<vmem>>, vector<8x256xf32>
    %c0_1 = arith.constant 0 : index
    %c0_2 = arith.constant 0 : index
    %1 = vector.load %arg5[%c0_1, %c0_2] : memref<8x128xf32, #tpu.memory_space<vmem>>, vector<1x128xf32>
    %c1 = arith.constant 1 : index
    %c0_3 = arith.constant 0 : index
    %2 = vector.load %arg5[%c1, %c0_3] : memref<8x128xf32, #tpu.memory_space<vmem>>, vector<1x128xf32>
    %c2 = arith.constant 2 : index
    %c0_4 = arith.constant 0 : index
    %3 = vector.load %arg5[%c2, %c0_4] : memref<8x128xf32, #tpu.memory_space<vmem>>, vector<1x128xf32>
    %c3 = arith.constant 3 : index
    %c0_5 = arith.constant 0 : index
    %4 = vector.load %arg5[%c3, %c0_5] : memref<8x128xf32, #tpu.memory_space<vmem>>, vector<1x128xf32>
    %c4 = arith.constant 4 : index
    %c0_6 = arith.constant 0 : index
    %5 = vector.load %arg5[%c4, %c0_6] : memref<8x128xf32, #tpu.memory_space<vmem>>, vector<1x128xf32>
    %c5 = arith.constant 5 : index
    %c0_7 = arith.constant 0 : index
    %6 = vector.load %arg5[%c5, %c0_7] : memref<8x128xf32, #tpu.memory_space<vmem>>, vector<1x128xf32>
    %7 = tpu.iota {dimensions = array<i32: 1>} : vector<1x128xi32>
    %c80_i32 = arith.constant 80 : i32
    %8 = vector.broadcast %c80_i32 : i32 to vector<1x128xi32>
    %9 = arith.cmpi slt, %7, %8 : vector<1x128xi32>
    %c0_8 = arith.constant 0 : index
    %c0_9 = arith.constant 0 : index
    %10 = vector.load %arg2[%c0_8, %c0_9] : memref<256x128xf32, #tpu.memory_space<vmem>>, vector<256x128xf32>
    %cst = arith.constant dense<0.000000e+00> : vector<8x128xf32>
    %11 = tpu.matmul %0, %10, %cst {dimension_numbers = #tpu.dot_dimension_numbers<[1], [0], [0], [1], [0, 0, 1, 1], [], []>} : vector<8x256xf32>, vector<256x128xf32>, vector<8x128xf32> -> vector<8x128xf32>
    %12 = vector.broadcast %1 : vector<1x128xf32> to vector<8x128xf32>
    %13 = arith.addf %11, %12 : vector<8x128xf32>
    %cst_10 = arith.constant dense<0.000000e+00> : vector<8xf32>
    %14 = vector.multi_reduction <add>, %13, %cst_10 [1] : vector<8x128xf32> to vector<8xf32>
    %15 = vector.shape_cast %14 : vector<8xf32> to vector<8x1xf32>
    %cst_11 = arith.constant 1.250000e-02 : f32
    %16 = vector.broadcast %cst_11 : f32 to vector<8x1xf32>
    %17 = arith.mulf %15, %16 : vector<8x1xf32>
    %18 = vector.broadcast %17 : vector<8x1xf32> to vector<8x128xf32>
    %19 = arith.subf %13, %18 : vector<8x128xf32>
    %cst_12 = arith.constant 0.000000e+00 : f32
    %20 = vector.shape_cast %9 : vector<1x128xi1> to vector<1x128xi1>
    %21 = vector.broadcast %20 : vector<1x128xi1> to vector<8x128xi1>
    %22 = vector.broadcast %cst_12 : f32 to vector<8x128xf32>
    %23 = arith.select %21, %19, %22 : vector<8x128xi1>, vector<8x128xf32>
    %24 = arith.mulf %23, %23 : vector<8x128xf32>
    %cst_13 = arith.constant dense<0.000000e+00> : vector<8xf32>
    %25 = vector.multi_reduction <add>, %24, %cst_13 [1] : vector<8x128xf32> to vector<8xf32>
    %26 = vector.shape_cast %25 : vector<8xf32> to vector<8x1xf32>
    %cst_14 = arith.constant 1.250000e-02 : f32
    %27 = vector.broadcast %cst_14 : f32 to vector<8x1xf32>
    %28 = arith.mulf %26, %27 : vector<8x1xf32>
    %cst_15 = arith.constant 9.99999974E-6 : f32
    %29 = vector.broadcast %cst_15 : f32 to vector<8x1xf32>
    %30 = arith.addf %28, %29 : vector<8x1xf32>
    %31 = math.rsqrt %30 : vector<8x1xf32>
    %32 = vector.broadcast %31 : vector<8x1xf32> to vector<8x128xf32>
    %33 = arith.mulf %23, %32 : vector<8x128xf32>
    %34 = vector.broadcast %2 : vector<1x128xf32> to vector<8x128xf32>
    %35 = arith.mulf %33, %34 : vector<8x128xf32>
    %36 = vector.broadcast %3 : vector<1x128xf32> to vector<8x128xf32>
    %37 = arith.addf %35, %36 : vector<8x128xf32>
    %cst_16 = arith.constant 0.000000e+00 : f32
    %38 = vector.broadcast %cst_16 : f32 to vector<8x128xf32>
    %39 = arith.maximumf %37, %38 : vector<8x128xf32>
    %c0_17 = arith.constant 0 : index
    %c0_18 = arith.constant 0 : index
    %40 = vector.load %arg3[%c0_17, %c0_18] : memref<128x128xf32, #tpu.memory_space<vmem>>, vector<128x128xf32>
    %cst_19 = arith.constant dense<0.000000e+00> : vector<8x128xf32>
    %41 = tpu.matmul %39, %40, %cst_19 {dimension_numbers = #tpu.dot_dimension_numbers<[1], [0], [0], [1], [0, 0, 1, 1], [], []>} : vector<8x128xf32>, vector<128x128xf32>, vector<8x128xf32> -> vector<8x128xf32>
    %42 = vector.broadcast %4 : vector<1x128xf32> to vector<8x128xf32>
    %43 = arith.addf %41, %42 : vector<8x128xf32>
    %cst_20 = arith.constant dense<0.000000e+00> : vector<8xf32>
    %44 = vector.multi_reduction <add>, %43, %cst_20 [1] : vector<8x128xf32> to vector<8xf32>
    %45 = vector.shape_cast %44 : vector<8xf32> to vector<8x1xf32>
    %cst_21 = arith.constant 1.250000e-02 : f32
    %46 = vector.broadcast %cst_21 : f32 to vector<8x1xf32>
    %47 = arith.mulf %45, %46 : vector<8x1xf32>
    %48 = vector.broadcast %47 : vector<8x1xf32> to vector<8x128xf32>
    %49 = arith.subf %43, %48 : vector<8x128xf32>
    %cst_22 = arith.constant 0.000000e+00 : f32
    %50 = vector.shape_cast %9 : vector<1x128xi1> to vector<1x128xi1>
    %51 = vector.broadcast %50 : vector<1x128xi1> to vector<8x128xi1>
    %52 = vector.broadcast %cst_22 : f32 to vector<8x128xf32>
    %53 = arith.select %51, %49, %52 : vector<8x128xi1>, vector<8x128xf32>
    %54 = arith.mulf %53, %53 : vector<8x128xf32>
    %cst_23 = arith.constant dense<0.000000e+00> : vector<8xf32>
    %55 = vector.multi_reduction <add>, %54, %cst_23 [1] : vector<8x128xf32> to vector<8xf32>
    %56 = vector.shape_cast %55 : vector<8xf32> to vector<8x1xf32>
    %cst_24 = arith.constant 1.250000e-02 : f32
    %57 = vector.broadcast %cst_24 : f32 to vector<8x1xf32>
    %58 = arith.mulf %56, %57 : vector<8x1xf32>
    %cst_25 = arith.constant 9.99999974E-6 : f32
    %59 = vector.broadcast %cst_25 : f32 to vector<8x1xf32>
    %60 = arith.addf %58, %59 : vector<8x1xf32>
    %61 = math.rsqrt %60 : vector<8x1xf32>
    %62 = vector.broadcast %61 : vector<8x1xf32> to vector<8x128xf32>
    %63 = arith.mulf %53, %62 : vector<8x128xf32>
    %64 = vector.broadcast %5 : vector<1x128xf32> to vector<8x128xf32>
    %65 = arith.mulf %63, %64 : vector<8x128xf32>
    %66 = vector.broadcast %6 : vector<1x128xf32> to vector<8x128xf32>
    %67 = arith.addf %65, %66 : vector<8x128xf32>
    %cst_26 = arith.constant 0.000000e+00 : f32
    %68 = vector.broadcast %cst_26 : f32 to vector<8x128xf32>
    %69 = arith.maximumf %67, %68 : vector<8x128xf32>
    %c0_27 = arith.constant 0 : index
    %c0_28 = arith.constant 0 : index
    %70 = vector.load %arg4[%c0_27, %c0_28] : memref<128x256xf32, #tpu.memory_space<vmem>>, vector<128x256xf32>
    %cst_29 = arith.constant dense<0.000000e+00> : vector<8x256xf32>
    %71 = tpu.matmul %69, %70, %cst_29 {dimension_numbers = #tpu.dot_dimension_numbers<[1], [0], [0], [1], [0, 0, 1, 1], [], []>} : vector<8x128xf32>, vector<128x256xf32>, vector<8x256xf32> -> vector<8x256xf32>
    %72 = arith.negf %71 : vector<8x256xf32>
    %73 = math.exp %72 : vector<8x256xf32>
    %cst_30 = arith.constant 1.000000e+00 : f32
    %74 = vector.broadcast %cst_30 : f32 to vector<8x256xf32>
    %75 = arith.addf %74, %73 : vector<8x256xf32>
    %76 = arith.divf %74, %75 : vector<8x256xf32>
    %c0_31 = arith.constant 0 : index
    %c0_32 = arith.constant 0 : index
    %77 = vector.load %arg6[%c0_31, %c0_32] : memref<8x256xf32, #tpu.memory_space<vmem>>, vector<8x256xf32>
    tpu.vector_store %arg6[%c0_31, %c0_32], %76 {strides = array<i32>} : memref<8x256xf32, #tpu.memory_space<vmem>>, vector<8x256xf32>,
    return
  }
  func.func @transform_0(%arg0: i32) -> (i32, i32) {
    %c0_i32 = arith.constant 0 : i32
    %c0_i32_0 = arith.constant 0 : i32
    return %arg0, %c0_i32 : i32, i32
  }
  func.func @transform_1(%arg0: i32) -> (i32, i32) {
    %c0_i32 = arith.constant 0 : i32
    %c0_i32_0 = arith.constant 0 : i32
    %c0_i32_1 = arith.constant 0 : i32
    return %c0_i32, %c0_i32_0 : i32, i32
  }
  func.func @transform_2(%arg0: i32) -> (i32, i32) {
    %c0_i32 = arith.constant 0 : i32
    %c0_i32_0 = arith.constant 0 : i32
    %c0_i32_1 = arith.constant 0 : i32
    return %c0_i32, %c0_i32_0 : i32, i32
  }
  func.func @transform_3(%arg0: i32) -> (i32, i32) {
    %c0_i32 = arith.constant 0 : i32
    %c0_i32_0 = arith.constant 0 : i32
    %c0_i32_1 = arith.constant 0 : i32
    return %c0_i32, %c0_i32_0 : i32, i32
  }
  func.func @transform_4(%arg0: i32) -> (i32, i32) {
    %c0_i32 = arith.constant 0 : i32
    %c0_i32_0 = arith.constant 0 : i32
    %c0_i32_1 = arith.constant 0 : i32
    return %c0_i32, %c0_i32_0 : i32, i32
  }
  func.func @transform_5(%arg0: i32) -> (i32, i32) {
    %c0_i32 = arith.constant 0 : i32
    %c0_i32_0 = arith.constant 0 : i32
    return %arg0, %c0_i32 : i32, i32
  }
}

</mosaic_0001>

<bundles_post_ra>
// kernel: mapping_mlp3_forward.1
= control target key start
LH: loop header
LB: loop body
LE: loop exit
PB: predicated region body
PF: predicated region fallthrough
CT: control target
= control target key end

     0   :  { %10 = vsyncpa [#allocation3], 0  ;;  %s834_s0 = inlined_call_operand.vmem [shape: f32[8,256], index: 0, kind: input, shape index: {}]   ;;  %s835_s1 = inlined_call_operand.hbm [shape: f32[256,128], index: 1, kind: input, shape index: {}]   ;;  %s836_s2 = inlined_call_operand.hbm [shape: f32[128,128], index: 2, kind: input, shape index: {}]   ;;  %s837_s3 = inlined_call_operand.hbm [shape: f32[128,256], index: 3, kind: input, shape index: {}]   ;;  %s838_s4 = inlined_call_operand.vmem [shape: f32[8,128], index: 4, kind: input, shape index: {}]   ;;  %s839_s5 = inlined_call_operand.vmem [shape: f32[8,256], index: 5, kind: output, shape index: {}]  }
   0x1   :  { %11 = vsyncpa [#allocation5], 0  ;;  %s714_s18 = smov [#allocation4]   ;;  %s715_s20 = smov [#allocation2]  }
   0x2   :  { %s31_s19 = sshll.u32 %s714_s18, 4  ;;  %s19_s21 = sshll.u32 %s715_s20, 4  ;;  %s32_s19 = int_to_ptr.vmem [resolvable:$true] %s31_s19  ;;  %s754_s21 = int_to_ptr.vmem [resolvable:$true] %s19_s21 }
   0x3   :  { %s644_s24 = scalar_lea.hbm %s836_s2, 2048 }
   0x4   :  { %p645_p0 = scmp.ne.s32.totalorder %s836_s2, %s644_s24  ;;  %p648_p1 = scmp.lt.u32.totalorder %s644_s24, %s836_s2 }
   0x6   :  { %p650_p2 = pnand %p648_p1, %p645_p0 }
   0x8   :  { %653 = shalt.err (!%p650_p2)
}
   0x9   :  { %s654_s29 = scalar_lea.vmem %s32_s19, 2048  ;;  %p659_p4 = scmp.lt.s32.totalorder %s32_s19, %s32_s19 }
   0xa   :  { %p655_p3 = scmp.ne.s32.totalorder %s32_s19, %s654_s29  ;;  %p660_p5 = scmp.lt.s32.totalorder %s654_s29, %s654_s29 }
   0xc   :  { %p661_p6 = por %p660_p5, %p659_p4 }
   0xe   :  { %p662_p7 = pnand %p661_p6, %p655_p3 }
  0x10   :  { %665 = shalt.err (!%p662_p7)
}
  0x11   :  { %s716_s30 = smov 128   ;;  %s717_s6 = smov 8  }
  0x12   :  { %37 = dma.hbm_to_vmem [thread:$0]  %s836_s2, 2048, %s32_s19, [#allocation5], %s716_s30, %s716_s30, %s717_s6  }
  0x13   :  { %s666_s11 = scalar_lea.hbm %s835_s1, 4096 }
  0x14   :  { %p667_p8 = scmp.ne.s32.totalorder %s835_s1, %s666_s11  ;;  %p670_p9 = scmp.lt.u32.totalorder %s666_s11, %s835_s1 }
  0x16   :  { %p672_p10 = pnand %p670_p9, %p667_p8 }
  0x18   :  { %675 = shalt.err (!%p672_p10)
}
  0x19   :  { %s676_s16 = scalar_lea.vmem %s754_s21, 4096  ;;  %p681_p12 = scmp.lt.s32.totalorder %s754_s21, %s754_s21 }
  0x1a   :  { %p677_p11 = scmp.ne.s32.totalorder %s754_s21, %s676_s16  ;;  %p682_p13 = scmp.lt.s32.totalorder %s676_s16, %s676_s16 }
  0x1c   :  { %p683_p0 = por %p682_p13, %p681_p12 }
  0x1e   :  { %p684_p1 = pnand %p683_p0, %p677_p11 }
  0x20   :  { %687 = shalt.err (!%p684_p1)
}
  0x21   :  { %25 = dma.hbm_to_vmem [thread:$0]  %s835_s1, 4096, %s754_s21, [#allocation3], %s716_s30, %s716_s30, %s717_s6  }
  0x22   :  { %s718_s18 = smov [#allocation6]   ;;  %s688_s23 = scalar_lea.hbm %s837_s3, 4096 }
  0x23   :  { %s43_s19 = sshll.u32 %s718_s18, 4  ;;  %p689_p2 = scmp.ne.s32.totalorder %s837_s3, %s688_s23  ;;  %s44_s19 = int_to_ptr.vmem [resolvable:$true] %s43_s19 }
  0x24   :  { %p692_p3 = scmp.lt.u32.totalorder %s688_s23, %s837_s3 }
  0x26   :  { %p694_p4 = pnand %p692_p3, %p689_p2 }
  0x28   :  { %697 = shalt.err (!%p694_p4)
}
  0x29   :  { %s698_s28 = scalar_lea.vmem %s44_s19, 4096  ;;  %p703_p6 = scmp.lt.s32.totalorder %s44_s19, %s44_s19 }
  0x2a   :  { %p699_p5 = scmp.ne.s32.totalorder %s44_s19, %s698_s28  ;;  %p704_p7 = scmp.lt.s32.totalorder %s698_s28, %s698_s28 }
  0x2c   :  { %p705_p8 = por %p704_p7, %p703_p6 }
  0x2e   :  { %p706_p9 = pnand %p705_p8, %p699_p5 }
  0x30   :  { %709 = shalt.err (!%p706_p9)
}
  0x31   :  { %s719_s1 = smov 256   ;;  %s720_s21 = smov 16  }
  0x32   :  { %49 = dma.hbm_to_vmem [thread:$0]  %s837_s3, 4096, %s44_s19, [#allocation5], %s719_s1, %s719_s1, %s720_s21  }
  0x33   :  { %710 = dma.done.wait [#allocation3], 4096  }
  0x34   :  { %711 = vsyncadd [#allocation3], 4294963200 }
  0x35   :  { %712 = dma.done.wait [#allocation5], 6144  }
  0x36   :  { %713 = vsyncadd [#allocation5], 4294961152  ;;  %v88_v0 = vld [vmem:[#allocation2 + $0x80] sm:$0xff]  ;;  %v89_v1 = vld [vmem:[#allocation2 + $0x88] sm:$0xff]  ;;  %v721_v58 = vmov 0.0|0.0   ;;  %v69_v62 = vlaneseq  ;;  %vm722_vm1 = vmmov 0  }
  0x37   :  { %v72_v2 = vld [vmem:[#allocation2] sm:$0xff]  ;;  %v534_v3 = vpack.c.bf16 %v89_v1, %v88_v0  ;;  %v73_v4 = vld [vmem:[#allocation2 + $0x8] sm:$0xff]  ;;  %v90_v5 = vld [vmem:[#allocation2 + $0x90] sm:$0xff]  ;;  %566 = vmatprep.subr.bf16.mxu1 %v721_v58 }
  0x38   :  { %v91_v6 = vld [vmem:[#allocation2 + $0x98] sm:$0xff]  ;;  %v536_v7 = vpack.c.bf16 %v73_v4, %v72_v2  ;;  %v74_v9 = vld [vmem:[#allocation2 + $0x10] sm:$0xff]  ;;  %v92_v11 = vld [vmem:[#allocation2 + $0xa0] sm:$0xff]  ;;  %v806_v63 = vand.u32 127, %v69_v62 }
  0x39   :  { %v538_v8 = vpack.c.bf16 %v91_v6, %v90_v5  ;;  %v75_v10 = vld [vmem:[#allocation2 + $0x18] sm:$0xff]  ;;  %535 = vmatprep.subr.bf16.mxu0 %v534_v3  ;;  %v93_v12 = vld [vmem:[#allocation2 + $0xa8] sm:$0xff]  ;;  %v76_v15 = vld [vmem:[#allocation2 + $0x20] sm:$0xff] }
  0x3a   :  { %537 = vmatpush3.bf16.msra.mxu0 %v536_v7  ;;  %v540_v13 = vpack.c.bf16 %v75_v10, %v74_v9  ;;  %v542_v14 = vpack.c.bf16 %v93_v12, %v92_v11  ;;  %v77_v16 = vld [vmem:[#allocation2 + $0x28] sm:$0xff]  ;;  %v94_v17 = vld [vmem:[#allocation2 + $0xb0] sm:$0xff]  ;;  %v95_v18 = vld [vmem:[#allocation2 + $0xb8] sm:$0xff]  ;;  %vm71_vm0 = vcmp.lt.s32.totalorder %v806_v63, 80 }
  0x3b   :  { %539 = vmatprep.subr.bf16.mxu0 %v538_v8  ;;  %v544_v19 = vpack.c.bf16 %v77_v16, %v76_v15  ;;  %v546_v20 = vpack.c.bf16 %v95_v18, %v94_v17  ;;  %v78_v21 = vld [vmem:[#allocation2 + $0x30] sm:$0xff]  ;;  %v79_v22 = vld [vmem:[#allocation2 + $0x38] sm:$0xff]  ;;  %v96_v23 = vld [vmem:[#allocation2 + $0xc0] sm:$0xff]  ;;  %v723_v16 = vmov 0.0  }
  0x3c   :  { %v97_v24 = vld [vmem:[#allocation2 + $0xc8] sm:$0xff]  ;;  %v548_v26 = vpack.c.bf16 %v79_v22, %v78_v21  ;;  %v80_v28 = vld [vmem:[#allocation2 + $0x40] sm:$0xff]  ;;  %v98_v30 = vld [vmem:[#allocation2 + $0xd0] sm:$0xff]  ;;  %531 = vmatprep.mubr.msk.f32.mxu1 %vm722_vm1, %v723_v16 }
  0x3d   :  { %v62_v25 = vld [vmem:[%s834_s0 + $0x8] sm:$0xff]  ;;  %v550_v27 = vpack.c.bf16 %v97_v24, %v96_v23  ;;  %v99_v31 = vld [vmem:[#allocation2 + $0xd8] sm:$0xff]  ;;  %v82_v34 = vld [vmem:[#allocation2 + $0x50] sm:$0xff] }
  0x3e   :  { %541 = vmatpush3.bf16.msra.mxu0 %v540_v13  ;;  %172 = vmatprep.mubr.f32.mxu0 %v62_v25  ;;  %v81_v29 = vld [vmem:[#allocation2 + $0x48] sm:$0xff]  ;;  %v554_v33 = vpack.c.bf16 %v99_v31, %v98_v30  ;;  %v83_v35 = vld [vmem:[#allocation2 + $0x58] sm:$0xff]  ;;  %v100_v36 = vld [vmem:[#allocation2 + $0xe0] sm:$0xff] }
  0x3f   :  { %543 = vmatprep.subr.bf16.mxu0 %v542_v14  ;;  %v552_v32 = vpack.c.bf16 %v81_v29, %v80_v28  ;;  %v101_v37 = vld [vmem:[#allocation2 + $0xe8] sm:$0xff]  ;;  %v556_v38 = vpack.c.bf16 %v83_v35, %v82_v34  ;;  %v84_v40 = vld [vmem:[#allocation2 + $0x60] sm:$0xff]  ;;  %v102_v42 = vld [vmem:[#allocation2 + $0xf0] sm:$0xff] }
  0x40   :  { %v558_v39 = vpack.c.bf16 %v101_v37, %v100_v36  ;;  %v85_v41 = vld [vmem:[#allocation2 + $0x68] sm:$0xff]  ;;  %v103_v43 = vld [vmem:[#allocation2 + $0xf8] sm:$0xff]  ;;  %v86_v46 = vld [vmem:[#allocation2 + $0x70] sm:$0xff] }
  0x41   :  { %v560_v44 = vpack.c.bf16 %v85_v41, %v84_v40  ;;  %v562_v45 = vpack.c.bf16 %v103_v43, %v102_v42  ;;  %v87_v47 = vld [vmem:[#allocation2 + $0x78] sm:$0xff]  ;;  %v61_v49 = vld [vmem:[%s834_s0] sm:$0xff]  ;;  %v204_v56 = vld [vmem:[#allocation4 + $0x8] sm:$0xff] }
  0x42   :  { %545 = vmatpush3.bf16.msra.mxu0 %v544_v19  ;;  %v564_v48 = vpack.c.bf16 %v87_v47, %v86_v46  ;;  %v439_v52 = vld [vmem:[%s838_s4] ss:$0 sm:$0xff]  ;;  %v205_v57 = vld [vmem:[#allocation4 + $0x10] sm:$0xff]  ;;  %v206_v60 = vld [vmem:[#allocation4 + $0x18] sm:$0xff] }
  0x43   :  { %547 = vmatprep.subr.bf16.mxu0 %v546_v20  ;;  %v203_v55 = vld [vmem:[#allocation4] sm:$0xff]  ;;  %v570_v61 = vpack.c.bf16 %v206_v60, %v205_v57  ;;  %v208_v6 = vld [vmem:[#allocation4 + $0x28] sm:$0xff]  ;;  %v209_v8 = vld [vmem:[#allocation4 + $0x30] sm:$0xff] }
  0x44   :  { %v567_v59 = vpack.c.bf16 %v204_v56, %v203_v55  ;;  %v207_v5 = vld [vmem:[#allocation4 + $0x20] sm:$0xff]  ;;  %v210_v9 = vld [vmem:[#allocation4 + $0x38] sm:$0xff]  ;;  %v212_v12 = vld [vmem:[#allocation4 + $0x48] sm:$0xff] }
  0x45   :  { %v573_v7 = vpack.c.bf16 %v208_v6, %v207_v5  ;;  %v576_v10 = vpack.c.bf16 %v210_v9, %v209_v8  ;;  %v211_v11 = vld [vmem:[#allocation4 + $0x40] sm:$0xff]  ;;  %v213_v14 = vld [vmem:[#allocation4 + $0x50] sm:$0xff]  ;;  %v214_v15 = vld [vmem:[#allocation4 + $0x58] sm:$0xff] }
  0x46   :  { %549 = vmatpush3.bf16.msra.mxu0 %v548_v26  ;;  %568 = vmatpush3.bf16.msra.mxu1 %v567_v59  ;;  %v579_v13 = vpack.c.bf16 %v212_v12, %v211_v11  ;;  %v582_v17 = vpack.c.bf16 %v214_v15, %v213_v14  ;;  %v215_v18 = vld [vmem:[#allocation4 + $0x60] sm:$0xff]  ;;  %v216_v19 = vld [vmem:[#allocation4 + $0x68] sm:$0xff]  ;;  %v217_v21 = vld [vmem:[#allocation4 + $0x70] sm:$0xff] }
  0x47   :  { %551 = vmatprep.subr.bf16.mxu0 %v550_v27  ;;  %569 = vmatprep.subr.bf16.mxu1 %v721_v58  ;;  %v585_v20 = vpack.c.bf16 %v216_v19, %v215_v18  ;;  %v218_v22 = vld [vmem:[#allocation4 + $0x78] sm:$0xff]  ;;  %v440_v28 = vld [vmem:[%s838_s4 + $0x1] ss:$0 sm:$0xff]  ;;  %v441_v30 = vld [vmem:[%s838_s4 + $0x2] ss:$0 sm:$0xff] }
  0x48   :  { %v588_v23 = vpack.c.bf16 %v218_v22, %v217_v21  ;;  %v442_v34 = vld [vmem:[%s838_s4 + $0x3] ss:$0 sm:$0xff]  ;;  %v318_v42 = vld [vmem:[#allocation6 + $0x10] sm:$0xff]  ;;  %v321_v43 = vld [vmem:[#allocation6 + $0x28] sm:$0xff] }
  0x49   :  { %v316_v40 = vld [vmem:[#allocation6] sm:$0xff]  ;;  %v326_v59 = vld [vmem:[#allocation6 + $0x50] sm:$0xff]  ;;  %v331_v62 = vld [vmem:[#allocation6 + $0x78] sm:$0xff] }
  0x4a   :  { %553 = vmatpush3.bf16.msra.mxu0 %v552_v32  ;;  %571 = vmatpush3.bf16.msra.mxu1 %v570_v61  ;;  %v320_v47 = vld [vmem:[#allocation6 + $0x20] sm:$0xff]  ;;  %v329_v61 = vld [vmem:[#allocation6 + $0x68] sm:$0xff]  ;;  %v335_v5 = vld [vmem:[#allocation6 + $0x98] sm:$0xff] }
  0x4b   :  { %555 = vmatprep.subr.bf16.mxu0 %v554_v33  ;;  %572 = vmatprep.subr.bf16.mxu1 %v721_v58  ;;  %v334_v63 = vld [vmem:[#allocation6 + $0x90] sm:$0xff]  ;;  %v337_v9 = vld [vmem:[#allocation6 + $0xa8] sm:$0xff]  ;;  %v336_v12 = vld [vmem:[#allocation6 + $0xa0] sm:$0xff] }
  0x4c   :  { %v341_v15 = vld [vmem:[#allocation6 + $0xc8] sm:$0xff]  ;;  %v340_v18 = vld [vmem:[#allocation6 + $0xc0] sm:$0xff]  ;;  %v342_v19 = vld [vmem:[#allocation6 + $0xd0] sm:$0xff] }
  0x4d   :  { %v345_v21 = vld [vmem:[#allocation6 + $0xe8] sm:$0xff]  ;;  %v347_v22 = vld [vmem:[#allocation6 + $0xf8] sm:$0xff] }
  0x4e   :  { %557 = vmatpush3.bf16.msra.mxu0 %v556_v38  ;;  %574 = vmatpush3.bf16.msra.mxu1 %v573_v7  ;;  %v317_v38 = vld [vmem:[#allocation6 + $0x8] sm:$0xff]  ;;  %v332_v7 = vld [vmem:[#allocation6 + $0x80] sm:$0xff] }
  0x4f   :  { %559 = vmatprep.subr.bf16.mxu0 %v558_v39  ;;  %575 = vmatprep.subr.bf16.mxu1 %v721_v58  ;;  %v319_v39 = vld [vmem:[#allocation6 + $0x18] sm:$0xff]  ;;  %v608_v8 = vpack.c.bf16 %v334_v63, %v332_v7 }
  0x50   :  { %v590_v41 = vpack.c.bf16 %v319_v39, %v317_v38 }
  0x52   :  { %561 = vmatpush3.bf16.msra.mxu0 %v560_v44  ;;  %577 = vmatpush3.bf16.msra.mxu1 %v576_v10  ;;  %v323_v44 = vld [vmem:[#allocation6 + $0x38] sm:$0xff] }
  0x53   :  { %563 = vmatprep.subr.bf16.mxu0 %v562_v45  ;;  %578 = vmatprep.subr.bf16.mxu1 %v721_v58  ;;  %v592_v45 = vpack.c.bf16 %v318_v42, %v316_v40  ;;  %v594_v46 = vpack.c.bf16 %v323_v44, %v321_v43  ;;  %v339_v10 = vld [vmem:[#allocation6 + $0xb8] sm:$0xff] }
  0x54   :  { %v610_v11 = vpack.c.bf16 %v339_v10, %v337_v9 }
  0x56   :  { %565 = vmatpush3.bf16.msra.mxu0 %v564_v48  ;;  %580 = vmatpush3.bf16.msra.mxu1 %v579_v13  ;;  %v322_v48 = vld [vmem:[#allocation6 + $0x30] sm:$0xff] }
  0x57   :  { %581 = vmatprep.subr.bf16.mxu1 %v721_v58  ;;  %591 = vmatprep.subr.bf16.mxu0 %v590_v41  ;;  %v338_v13 = vld [vmem:[#allocation6 + $0xb0] sm:$0xff] }
  0x58   :  { %v612_v14 = vpack.c.bf16 %v338_v13, %v336_v12 }
  0x59   :  { %173 = vmatmul.mubr.f32.vlgmr.msra.gmra.mrb[0].mxu0 %v61_v49  ;;  %v325_v49 = vld [vmem:[#allocation6 + $0x48] sm:$0xff] }
  0x5a   :  { %412 = vmatprep.mubr.f32.mxu0 %v723_v16  ;;  %583 = vmatpush3.bf16.msra.mxu1 %v582_v17  ;;  %v343_v16 = vld [vmem:[#allocation6 + $0xd8] sm:$0xff] }
  0x5b   :  { %584 = vmatprep.subr.bf16.mxu1 %v721_v58  ;;  %593 = vmatpush1.bf16.msra.mxu0 %v592_v45  ;;  %v614_v17 = vpack.c.bf16 %v343_v16, %v341_v15 }
  0x5c   :  { %595 = vmatprep.subr.bf16.mxu0 %v594_v46 }
  0x5e   :  { %586 = vmatpush3.bf16.msra.mxu1 %v585_v20  ;;  %v616_v20 = vpack.c.bf16 %v342_v19, %v340_v18 }
  0x5f   :  { %587 = vmatprep.subr.bf16.mxu1 %v721_v58  ;;  %v324_v58 = vld [vmem:[#allocation6 + $0x40] sm:$0xff] }
  0x60   :  { %v600_v60 = vpack.c.bf16 %v326_v59, %v324_v58 }
  0x62   :  { %589 = vmatpush3.bf16.msra.mxu1 %v588_v23  ;;  %v344_v23 = vld [vmem:[#allocation6 + $0xe0] sm:$0xff] }
 0x12c   :  { %v479_v50 = vpop.f32.mrb[0].mxu0 }
 0x12d   :  { %v480_v51 = vpop.f32.mrb[1].mxu0 }
 0x12e   :  { %v481_v53 = vadd.f32 %v480_v51, %v479_v50  ;;  %v327_v50 = vld [vmem:[#allocation6 + $0x58] sm:$0xff]  ;;  %v596_v51 = vpack.c.bf16 %v322_v48, %v320_v47 }
 0x130   :  { %v175_v54 = vadd.f32 %v481_v53, %v439_v52  ;;  %v598_v52 = vpack.c.bf16 %v327_v50, %v325_v49  ;;  %597 = vmatpush1.bf16.msra.mxu0 %v596_v51 }
 0x132   :  { %178 = vadd.xlane.f32.xlu0 %v175_v54  ;;  %599 = vmatprep.subr.bf16.mxu0 %v598_v52 }
 0x134   :  { %601 = vmatpush1.bf16.msra.mxu0 %v600_v60 }
 0x1bf   :  { %v179_v0 = vpop.xlane.xlu0 %178 }
 0x1c0   :  { %v180_v1 = vmul.f32 0.0125, %v179_v0  ;;  %v602_v0 = vpack.c.bf16 %v331_v62, %v329_v61 }
 0x1c2   :  { %v181_v2 = vsub.f32 %v175_v54, %v180_v1  ;;  %v328_v1 = vld [vmem:[#allocation6 + $0x60] sm:$0xff]  ;;  %603 = vmatprep.subr.bf16.mxu0 %v602_v0 }
 0x1c4   :  { %v184_v3 = vsel %vm71_vm0, %v181_v2, 0.0  ;;  %v330_v2 = vld [vmem:[#allocation6 + $0x70] sm:$0xff] }
 0x1c5   :  { %v185_v4 = vmul.f32 %v184_v3, %v184_v3 }
 0x1c7   :  { %186 = vadd.xlane.f32.xlu0 %v185_v4  ;;  %v333_v4 = vld [vmem:[#allocation6 + $0x88] sm:$0xff] }
 0x1c8   :  { %v606_v6 = vpack.c.bf16 %v335_v5, %v333_v4 }
 0x254   :  { %v187_v24 = vpop.xlane.xlu0 %186 }
 0x255   :  { %v188_v25 = vmul.f32 0.0125, %v187_v24  ;;  %v618_v24 = vpack.c.bf16 %v347_v22, %v345_v21 }
 0x257   :  { %v189_v26 = vadd.f32 1e-05, %v188_v25  ;;  %v346_v25 = vld [vmem:[#allocation6 + $0xf0] sm:$0xff] }
 0x259   :  { %632 = vrsqrt.f32 %v189_v26  ;;  %v620_v26 = vpack.c.bf16 %v346_v25, %v344_v23 }
 0x263   :  { %v633_v27 = vpop.eup %632 }
 0x264   :  { %v191_v29 = vmul.f32 %v633_v27, %v184_v3  ;;  %v604_v3 = vpack.c.bf16 %v330_v2, %v328_v1 }
 0x266   :  { %v196_v31 = vmul.f32 %v440_v28, %v191_v29  ;;  %605 = vmatpush1.bf16.msra.mxu0 %v604_v3 }
 0x267   :  { %607 = vmatprep.subr.bf16.mxu0 %v606_v6 }
 0x268   :  { %v201_v32 = vadd.f32 %v441_v30, %v196_v31  ;;  %v443_v31 = vld [vmem:[%s838_s4 + $0x4] ss:$0 sm:$0xff] }
 0x26a   :  { %v202_v33 = vmax.f32 %v201_v32, 0.0  ;;  %609 = vmatpush1.bf16.msra.mxu0 %v608_v8 }
 0x26b   :  { %611 = vmatprep.subr.bf16.mxu0 %v610_v11 }
 0x26c   :  { %532 = vmatmul.mubr.f32.vlgmr.msra.gmra.mrb[0].mxu1 %v202_v33  ;;  %v444_v33 = vld [vmem:[%s838_s4 + $0x5] ss:$0 sm:$0xff] }
 0x26e   :  { %613 = vmatpush1.bf16.msra.mxu0 %v612_v14 }
 0x26f   :  { %615 = vmatprep.subr.bf16.mxu0 %v614_v17 }
 0x272   :  { %617 = vmatpush1.bf16.msra.mxu0 %v616_v20 }
 0x273   :  { %619 = vmatprep.subr.bf16.mxu0 %v618_v24 }
 0x276   :  { %621 = vmatpush1.bf16.msra.mxu0 %v620_v26 }
 0x33f   :  { %v289_v35 = vpop.f32.mrb[0].mxu1 }
 0x340   :  { %v290_v36 = vadd.f32 %v442_v34, %v289_v35  ;;  %v533_v37 = vpop.f32.mrb[1].mxu1 }
 0x342   :  { %293 = vadd.xlane.f32.xlu1 %v290_v36 }
 0x3cf   :  { %v294_v53 = vpop.xlane.xlu1 %293 }
 0x3d0   :  { %v295_v54 = vmul.f32 0.0125, %v294_v53 }
 0x3d2   :  { %v296_v55 = vsub.f32 %v290_v36, %v295_v54 }
 0x3d4   :  { %v297_v56 = vsel %vm71_vm0, %v296_v55, 0.0 }
 0x3d5   :  { %v298_v57 = vmul.f32 %v297_v56, %v297_v56 }
 0x3d7   :  { %299 = vadd.xlane.f32.xlu1 %v298_v57 }
 0x464   :  { %v300_v27 = vpop.xlane.xlu1 %299 }
 0x465   :  { %v301_v28 = vmul.f32 0.0125, %v300_v27 }
 0x467   :  { %v302_v29 = vadd.f32 1e-05, %v301_v28 }
 0x469   :  { %634 = vrsqrt.f32 %v302_v29 }
 0x473   :  { %v635_v30 = vpop.eup %634 }
 0x474   :  { %v304_v32 = vmul.f32 %v635_v30, %v297_v56 }
 0x476   :  { %v309_v34 = vmul.f32 %v443_v31, %v304_v32 }
 0x478   :  { %v314_v35 = vadd.f32 %v444_v33, %v309_v34 }
 0x47a   :  { %v315_v36 = vmax.f32 %v314_v35, 0.0 }
 0x47c   :  { %413 = vmatmul.mubr.f32.vlgmr.msra.gmra.mrb[2].mxu0 %v315_v36 }
 0x54f   :  { %v414_v37 = vpop.f32.mrb[2].mxu0 }
 0x550   :  { %v445_v38 = vmul.f32 -1.442695, %v414_v37  ;;  %v416_v39 = vpop.f32.mrb[3].mxu0 }
 0x551   :  { %v446_v40 = vmul.f32 -1.442695, %v416_v39 }
 0x552   :  { %636 = vpow2.f32 %v445_v38 }
 0x553   :  { %638 = vpow2.f32 %v446_v40 }
 0x55c   :  { %v637_v41 = vpop.eup %636 }
 0x55d   :  { %v639_v42 = vpop.eup %638  ;;  %v425_v43 = vadd.f32 1.0, %v637_v41 }
 0x55e   :  { %v426_v44 = vadd.f32 1.0, %v639_v42 }
 0x55f   :  { %640 = vrcp.f32 %v425_v43 }
 0x560   :  { %642 = vrcp.f32 %v426_v44 }
 0x569   :  { %v641_v45 = vpop.eup %640 }
 0x56a   :  { %v643_v46 = vpop.eup %642  ;;  %431 = vst [vmem:[%s839_s5] sm:$0xff] %v641_v45 }
 0x56b   :  { %432 = vst [vmem:[%s839_s5 + $0x8] sm:$0xff] %v643_v46 }
 0x56c   :  { %437 = vsyncpa [#allocation3], 1 }
 0x56d   :  { %438 = vsyncpa [#allocation5], 1 }

</bundles_post_ra>
